<compile_context>
chip_gen: v7x
topology: tpu7x:2x2x1
jax: 0.10.0
libtpu: 0.0.40
codegen_flags: <defaults>
</compile_context>

<pallas_src>
import jax
import jax.numpy as jnp
from jax.experimental import pallas as pl
from jax.experimental.pallas import tpu as pltpu

_LANES = 128
_MAX_BLOCK_ROWS = 4096   # 4096*128*4B = 2 MiB / f32 input / step
_CHUNK_ROWS = 512        # compute sub-chunk: bounds in-kernel temp footprint
_PAD_LOGIT = -1.0e4      # sigmoid(-1e4)=0 and softplus(-1e4)=0 -> contributes 0


def _choose_block_rows(rows):
    """Multiple-of-8 block height; aims for >=2 blocks (megacore) and, when
    larger than one chunk, a multiple of _CHUNK_ROWS so chunks tile evenly."""
    if rows <= 8:
        return rows                      # full dim (allowed even if < 8)
    half = -(-rows // 2)                 # ceil(rows / 2)
    if half <= _CHUNK_ROWS:
        return -(-half // 8) * 8         # round up to a multiple of 8
    return min(_MAX_BLOCK_ROWS, -(-half // _CHUNK_ROWS) * _CHUNK_ROWS)


def _make_dice_bce_kernel(block_rows, chunk_rows, n_total, ragged):
    """Kernel over one (block_rows, 128) tile of x and y.

    Emits an (8, 128) tile: sublane 0 = lane-wise sum(sigmoid(x)),
    1 = sum(y), 2 = sum(sigmoid(x)*y), 3 = sum(bce), 4..7 = 0.
    """
    nchunks = block_rows // chunk_rows

    def kernel(x_ref, y_ref, o_ref):
        blk_row0 = pl.program_id(0) * block_rows

        def chunk_body(c, carry):
            s_p, s_y, s_i, s_b = carry
            r0 = pl.multiple_of(c * chunk_rows, chunk_rows)
            x = x_ref[pl.ds(r0, chunk_rows), :].astype(jnp.float32)
            y = y_ref[pl.ds(r0, chunk_rows), :].astype(jnp.float32)

            if ragged:
                # Last grid block may extend past the real data: substitute
                # neutral values before any exp/log so garbage can't poison
                # the sums (neutral pair contributes exactly 0 everywhere).
                row = jax.lax.broadcasted_iota(jnp.int32, (chunk_rows, _LANES), 0)
                lane = jax.lax.broadcasted_iota(jnp.int32, (chunk_rows, _LANES), 1)
                gidx = (blk_row0 + r0 + row) * _LANES + lane
                valid = gidx < n_total
                x = jnp.where(valid, x, _PAD_LOGIT)
                y = jnp.where(valid, y, 0.0)

            # Shared exp(-|x|) feeds both sigmoid and softplus (fewer EUP ops).
            e = jnp.exp(-jnp.abs(x))
            sp0 = jnp.log1p(e)                                  # softplus(-|x|)
            p = jnp.where(x >= 0.0, 1.0, e) / (1.0 + e)         # sigmoid(x)

            # BCE from logits with PyTorch's -100 log clamp:
            #   -log(sigmoid(x))     = softplus(-x) = sp0 + relu(-x)
            #   -log(1 - sigmoid(x)) = softplus( x) = sp0 + relu( x)
            neg_log_p = jnp.minimum(sp0 + jnp.maximum(-x, 0.0), 100.0)
            neg_log_1mp = jnp.minimum(sp0 + jnp.maximum(x, 0.0), 100.0)
            bce = y * neg_log_p + (1.0 - y) * neg_log_1mp

            return (s_p + jnp.sum(p, axis=0, keepdims=True),
                    s_y + jnp.sum(y, axis=0, keepdims=True),
                    s_i + jnp.sum(p * y, axis=0, keepdims=True),
                    s_b + jnp.sum(bce, axis=0, keepdims=True))

        zero = jnp.zeros((1, _LANES), jnp.float32)
        s_p, s_y, s_i, s_b = jax.lax.fori_loop(
            0, nchunks, chunk_body, (zero, zero, zero, zero))

        o_ref[...] = jnp.zeros((8, _LANES), jnp.float32)
        o_ref[0:1, :] = s_p
        o_ref[1:2, :] = s_y
        o_ref[2:3, :] = s_i
        o_ref[3:4, :] = s_b

    return kernel


@jax.jit
def dice_bce_loss(X, y, smooth=1.0):
    """Pallas equivalent of DiceBCELoss().forward(X, y, smooth)."""
    x_flat = jnp.reshape(X, (-1,))          # native dtype; kernel upcasts
    y_flat = jnp.reshape(y, (-1,))
    n = x_flat.shape[0]

    lane_pad = (-n) % _LANES
    if lane_pad:
        # TODO(synk): only hit when numel % 128 != 0; this tiny neutral pad
        # still costs a copy of the inputs — acceptable fallback path.
        x_flat = jnp.pad(x_flat, (0, lane_pad), constant_values=_PAD_LOGIT)
        y_flat = jnp.pad(y_flat, (0, lane_pad))
    rows = (n + lane_pad) // _LANES

    block_rows = _choose_block_rows(rows)
    chunk_rows = min(block_rows, _CHUNK_ROWS)
    assert block_rows % chunk_rows == 0
    nblocks = pl.cdiv(rows, block_rows)
    ragged = (nblocks * block_rows) != rows   # in-kernel tail mask needed?

    x2 = x_flat.reshape(rows, _LANES)
    y2 = y_flat.reshape(rows, _LANES)

    kernel = _make_dice_bce_kernel(block_rows, chunk_rows, n, ragged)
    blk = pl.BlockSpec((block_rows, _LANES), lambda i: (i, 0))
    partial_sums = pl.pallas_call(
        kernel,
        out_shape=jax.ShapeDtypeStruct((nblocks * 8, _LANES), jnp.float32),
        grid_spec=pltpu.PrefetchScalarGridSpec(
            num_scalar_prefetch=0,
            grid=(nblocks,),
            in_specs=[blk, blk],
            out_specs=pl.BlockSpec((8, _LANES), lambda i: (i, 0)),
        ),
        compiler_params=pltpu.CompilerParams(
            dimension_semantics=("parallel",),
            vmem_limit_bytes=32 * 1024 * 1024,
        ),
    )(x2, y2)

    # Combine per-block lane-wise partial sums and apply the loss formula
    # (trivial work, fused into the same jit).
    parts = partial_sums.reshape(nblocks, 8, _LANES)[:, :4, :]
    sums = jnp.sum(parts, axis=(0, 2))
    s_p, s_y, s_i, s_b = sums[0], sums[1], sums[2], sums[3]
    dice = 1.0 - (2.0 * s_i + smooth) / (s_p + s_y + smooth)
    return dice + s_b / n


def _reference(X, y, smooth=1.0):
    # PyTorch-faithful reference: sigmoid + dice + BCE with -100 log clamp.
    p = jax.nn.sigmoid(X.astype(jnp.float32)).reshape(-1)
    t = y.astype(jnp.float32).reshape(-1)
    inter = jnp.sum(p * t)
    dice = 1.0 - (2.0 * inter + smooth) / (jnp.sum(p) + jnp.sum(t) + smooth)
    bce = jnp.mean(
        -(t * jnp.maximum(jnp.log(p), -100.0)
          + (1.0 - t) * jnp.maximum(jnp.log(1.0 - p), -100.0))
    )
    return dice + bce


if __name__ == "__main__":
    key = jax.random.PRNGKey(0)
    kx, ky = jax.random.split(key)
    # NCHW-shaped logits and binary targets, small sizes.
    X = jax.random.normal(kx, (2, 4, 16, 16), dtype=jnp.float32)
    y = (jax.random.uniform(ky, (2, 4, 16, 16)) > 0.5).astype(jnp.float32)

    loss = dice_bce_loss(X, y, smooth=1.0)
    jax.block_until_ready(loss)

    ref = _reference(X, y, smooth=1.0)
    assert jnp.allclose(loss, ref, rtol=1e-5, atol=1e-5), (loss, ref)
    print("KERNEL_OK")
</pallas_src>

<mosaic_0001>
module attributes {stable_mosaic.version = 11 : i64} {
  func.func @kernel(%arg0: i32, %arg1: memref<8x128xf32, #tpu.memory_space<vmem>>, %arg2: memref<8x128xf32, #tpu.memory_space<vmem>>, %arg3: memref<8x128xf32, #tpu.memory_space<vmem>>) attributes {dimension_semantics = [#tpu.dimension_semantics<parallel>], iteration_bounds = array<i64: 2>, scalar_prefetch = 0 : i64, scratch_operands = 0 : i64, tpu.core_type = #tpu.core_type<tc>, window_params = [{transform_indices = @transform_0, window_bounds = array<i64: 8, 128>}, {transform_indices = @transform_1, window_bounds = array<i64: 8, 128>}, {transform_indices = @transform_2, window_bounds = array<i64: 8, 128>}]} {
    %cst = arith.constant 0.000000e+00 : f32
    %0 = vector.broadcast %cst : f32 to vector<1x128xf32>
    %c0_i32 = arith.constant 0 : i32
    %c8_i32 = arith.constant 8 : i32
    %1 = arith.muli %c0_i32, %c8_i32 : i32
    %2 = tpu.assume_multiple %1, 8 : i32
    %3 = arith.index_cast %2 : i32 to index
    %c0 = arith.constant 0 : index
    %4 = vector.load %arg1[%3, %c0] : memref<8x128xf32, #tpu.memory_space<vmem>>, vector<8x128xf32>
    %5 = arith.index_cast %2 : i32 to index
    %c0_0 = arith.constant 0 : index
    %6 = vector.load %arg2[%5, %c0_0] : memref<8x128xf32, #tpu.memory_space<vmem>>, vector<8x128xf32>
    %7 = math.absf %4 : vector<8x128xf32>
    %cst_1 = arith.constant 0.000000e+00 : f32
    %8 = vector.broadcast %cst_1 : f32 to vector<8x128xf32>
    %9 = arith.subf %8, %7 : vector<8x128xf32>
    %10 = math.exp %9 : vector<8x128xf32>
    %11 = math.log1p %10 : vector<8x128xf32>
    %cst_2 = arith.constant 0.000000e+00 : f32
    %12 = vector.broadcast %cst_2 : f32 to vector<8x128xf32>
    %13 = arith.cmpf oge, %4, %12 : vector<8x128xf32>
    %cst_3 = arith.constant 1.000000e+00 : f32
    %14 = vector.broadcast %cst_3 : f32 to vector<8x128xf32>
    %15 = arith.select %13, %14, %10 : vector<8x128xi1>, vector<8x128xf32>
    %cst_4 = arith.constant 1.000000e+00 : f32
    %16 = vector.broadcast %cst_4 : f32 to vector<8x128xf32>
    %17 = arith.addf %16, %10 : vector<8x128xf32>
    %18 = arith.divf %15, %17 : vector<8x128xf32>
    %cst_5 = arith.constant 0.000000e+00 : f32
    %19 = vector.broadcast %cst_5 : f32 to vector<8x128xf32>
    %20 = arith.subf %19, %4 : vector<8x128xf32>
    %cst_6 = arith.constant 0.000000e+00 : f32
    %21 = vector.broadcast %cst_6 : f32 to vector<8x128xf32>
    %22 = arith.maximumf %20, %21 : vector<8x128xf32>
    %23 = arith.addf %11, %22 : vector<8x128xf32>
    %cst_7 = arith.constant 1.000000e+02 : f32
    %24 = vector.broadcast %cst_7 : f32 to vector<8x128xf32>
    %25 = arith.minimumf %23, %24 : vector<8x128xf32>
    %cst_8 = arith.constant 0.000000e+00 : f32
    %26 = vector.broadcast %cst_8 : f32 to vector<8x128xf32>
    %27 = arith.maximumf %4, %26 : vector<8x128xf32>
    %28 = arith.addf %11, %27 : vector<8x128xf32>
    %cst_9 = arith.constant 1.000000e+02 : f32
    %29 = vector.broadcast %cst_9 : f32 to vector<8x128xf32>
    %30 = arith.minimumf %28, %29 : vector<8x128xf32>
    %31 = arith.mulf %6, %25 : vector<8x128xf32>
    %cst_10 = arith.constant 1.000000e+00 : f32
    %32 = vector.broadcast %cst_10 : f32 to vector<8x128xf32>
    %33 = arith.subf %32, %6 : vector<8x128xf32>
    %34 = arith.mulf %33, %30 : vector<8x128xf32>
    %35 = arith.addf %31, %34 : vector<8x128xf32>
    %cst_11 = arith.constant dense<0.000000e+00> : vector<128xf32>
    %36 = vector.multi_reduction <add>, %18, %cst_11 [0] : vector<8x128xf32> to vector<128xf32>
    %37 = vector.shape_cast %36 : vector<128xf32> to vector<1x128xf32>
    %38 = arith.addf %0, %37 : vector<1x128xf32>
    %cst_12 = arith.constant dense<0.000000e+00> : vector<128xf32>
    %39 = vector.multi_reduction <add>, %6, %cst_12 [0] : vector<8x128xf32> to vector<128xf32>
    %40 = vector.shape_cast %39 : vector<128xf32> to vector<1x128xf32>
    %41 = arith.addf %0, %40 : vector<1x128xf32>
    %42 = arith.mulf %18, %6 : vector<8x128xf32>
    %cst_13 = arith.constant dense<0.000000e+00> : vector<128xf32>
    %43 = vector.multi_reduction <add>, %42, %cst_13 [0] : vector<8x128xf32> to vector<128xf32>
    %44 = vector.shape_cast %43 : vector<128xf32> to vector<1x128xf32>
    %45 = arith.addf %0, %44 : vector<1x128xf32>
    %cst_14 = arith.constant dense<0.000000e+00> : vector<128xf32>
    %46 = vector.multi_reduction <add>, %35, %cst_14 [0] : vector<8x128xf32> to vector<128xf32>
    %47 = vector.shape_cast %46 : vector<128xf32> to vector<1x128xf32>
    %48 = arith.addf %0, %47 : vector<1x128xf32>
    %c1_i32 = arith.constant 1 : i32
    %cst_15 = arith.constant 0.000000e+00 : f32
    %49 = vector.broadcast %cst_15 : f32 to vector<8x128xf32>
    %c0_16 = arith.constant 0 : index
    %c0_17 = arith.constant 0 : index
    %50 = vector.load %arg3[%c0_16, %c0_17] : memref<8x128xf32, #tpu.memory_space<vmem>>, vector<8x128xf32>
    tpu.vector_store %arg3[%c0_16, %c0_17], %49 {strides = array<i32>} : memref<8x128xf32, #tpu.memory_space<vmem>>, vector<8x128xf32>,
    %c0_18 = arith.constant 0 : index
    %c0_19 = arith.constant 0 : index
    %51 = vector.load %arg3[%c0_18, %c0_19] : memref<8x128xf32, #tpu.memory_space<vmem>>, vector<1x128xf32>
    tpu.vector_store %arg3[%c0_18, %c0_19], %38 {strides = array<i32>} : memref<8x128xf32, #tpu.memory_space<vmem>>, vector<1x128xf32>,
    %c1 = arith.constant 1 : index
    %c0_20 = arith.constant 0 : index
    %52 = vector.load %arg3[%c1, %c0_20] : memref<8x128xf32, #tpu.memory_space<vmem>>, vector<1x128xf32>
    tpu.vector_store %arg3[%c1, %c0_20], %41 {strides = array<i32>} : memref<8x128xf32, #tpu.memory_space<vmem>>, vector<1x128xf32>,
    %c2 = arith.constant 2 : index
    %c0_21 = arith.constant 0 : index
    %53 = vector.load %arg3[%c2, %c0_21] : memref<8x128xf32, #tpu.memory_space<vmem>>, vector<1x128xf32>
    tpu.vector_store %arg3[%c2, %c0_21], %45 {strides = array<i32>} : memref<8x128xf32, #tpu.memory_space<vmem>>, vector<1x128xf32>,
    %c3 = arith.constant 3 : index
    %c0_22 = arith.constant 0 : index
    %54 = vector.load %arg3[%c3, %c0_22] : memref<8x128xf32, #tpu.memory_space<vmem>>, vector<1x128xf32>
    tpu.vector_store %arg3[%c3, %c0_22], %48 {strides = array<i32>} : memref<8x128xf32, #tpu.memory_space<vmem>>, vector<1x128xf32>,
    return
  }
  func.func @transform_0(%arg0: i32) -> (i32, i32) {
    %c0_i32 = arith.constant 0 : i32
    %c0_i32_0 = arith.constant 0 : i32
    return %arg0, %c0_i32 : i32, i32
  }
  func.func @transform_1(%arg0: i32) -> (i32, i32) {
    %c0_i32 = arith.constant 0 : i32
    %c0_i32_0 = arith.constant 0 : i32
    return %arg0, %c0_i32 : i32, i32
  }
  func.func @transform_2(%arg0: i32) -> (i32, i32) {
    %c0_i32 = arith.constant 0 : i32
    %c0_i32_0 = arith.constant 0 : i32
    return %arg0, %c0_i32 : i32, i32
  }
}

</mosaic_0001>

<bundles_post_ra>
// kernel: dice_bce_loss.1
= control target key start
LH: loop header
LB: loop body
LE: loop exit
PB: predicated region body
PF: predicated region fallthrough
CT: control target
= control target key end

     0   :  { %s335_s9 = smov 0   ;;  %s362_s0 = inlined_call_operand.vmem [shape: f32[16,128], index: 0, kind: input, shape index: {}]   ;;  %s363_s1 = inlined_call_operand.vmem [shape: f32[16,128], index: 1, kind: input, shape index: {}]   ;;  %s364_s2 = inlined_call_operand.vmem [shape: f32[16,128], index: 2, kind: output, shape index: {}]  }
   0x1 LB: > { %s286_s10 = sadd.s32 4294967295, %s317_s9   ;;  %p290_p0 = scmp.ge.s32.totalorder %s317_s9, 1  ;;  %s317_s9 = sphi %s335_s9, %s12_s9  }
   0x2   : > { %p120_p1 = scmp.lt.s32.totalorder %s317_s9, 3 }
   0x4   : > { %p121_p2 = pnand %p290_p0, %p120_p1 }
   0x5   : > { %p144_p3 = scmp.lt.s32.totalorder (!%p121_p2), %s286_s10, 1  ;;  %v319_v3 = vmov (!%p121_p2), 0.0  }
   0x6   : > { %124 = sbr.rel (%p121_p2) target bundleno = 72 (0x48), region = 28 }
   0xd   : > { %s366_s10 = smov (!%p144_p3, %s286_s10), 1 }
   0xe   : > { %s291_s11 = sshll.u32 %s366_s10, 3 }
   0xf   : > { %s147_s14 = scalar_lea.vmem %s362_s0, %s291_s11  ;;  %s151_s17 = scalar_lea.vmem %s363_s1, %s291_s11 }
  0x10   : > { %s352_s20 = scalar_lea.vmem %s364_s2, %s291_s11  ;;  %v156_v0 = vld [vmem:[%s147_s14] sm:$0xff] }
  0x11   : > { %v157_v1 = vld [vmem:[%s151_s17] sm:$0xff]  ;;  %v158_v2 = vand.u32 2147483647, %v156_v0  ;;  %216 = vst [vmem:[%s352_s20] sm:$0xff] %v319_v3  ;;  %vm171_vm0 = vcmp.ge.f32.partialorder %v156_v0, 0.0  ;;  %v176_v16 = vsub.f32 0.0, %v156_v0  ;;  %v180_v23 = vmax.f32 %v156_v0, 0.0 }
  0x12   : > { %v194_v4 = vrot.slane %v157_v1, 4  ;;  %v184_v29 = vsub.f32 1.0, %v157_v1 }
  0x13   : > { %v159_v5 = vsub.f32 0.0, %v158_v2  ;;  %v177_v22 = vmax.f32 %v176_v16, 0.0 }
  0x14   : > { %v195_v6 = vadd.f32 %v194_v4, %v157_v1 }
  0x15   : > { %v160_v7 = vmul.f32 1.442695, %v159_v5 }
  0x16   : > { %v196_v8 = vrot.slane %v195_v6, 2 }
  0x17   : > { %305 = vpow2.f32 %v160_v7 }
  0x18   : > { %v197_v9 = vadd.f32 %v196_v8, %v195_v6 }
  0x1a   : > { %v198_v10 = vrot.slane %v197_v9, 1 }
  0x1c   : > { %v199_v11 = vadd.f32 %v198_v10, %v197_v9 }
  0x1e   : > { %218 = vst [vmem:[%s352_s20 + $0x1] sm:$0x1] %v199_v11 }
  0x21   : > { %v306_v12 = vpop.eup %305 }
  0x22   : > { %v162_v13 = vadd.f32 1.0, %v306_v12  ;;  %v165_v14 = vmul.f32 -0.5, %v306_v12  ;;  %v168_v17 = vand.u32 2147483647, %v306_v12  ;;  %v172_v18 = vsel %vm171_vm0, 1.0, %v306_v12 }
  0x24   : > { %307 = vrcp.f32 %v162_v13  ;;  %v166_v15 = vadd.f32 1.0, %v165_v14  ;;  %vm169_vm1 = vcmp.lt.f32.partialorder %v168_v17, 0.0004427343 }
  0x25   : > { %309 = vlog2.f32 %v162_v13 }
  0x26   : > { %v167_v20 = vmul.f32 %v306_v12, %v166_v15 }
  0x2e   : > { %v308_v19 = vpop.eup %307 }
  0x2f   : > { %v310_v21 = vpop.eup %309  ;;  %v175_v24 = vmul.f32 %v308_v19, %v172_v18 }
  0x30   : > { %v164_v25 = vmul.f32 0.6931472, %v310_v21 }
  0x31   : > { %v187_v26 = vrot.slane %v175_v24, 4  ;;  %v201_v27 = vmul.f32 %v175_v24, %v157_v1 }
  0x32   : > { %v170_v28 = vsel %vm169_vm1, %v167_v20, %v164_v25 }
  0x33   : > { %v188_v30 = vadd.f32 %v187_v26, %v175_v24  ;;  %v202_v31 = vrot.slane %v201_v27, 4  ;;  %v178_v32 = vadd.f32 %v177_v22, %v170_v28  ;;  %v181_v33 = vadd.f32 %v180_v23, %v170_v28 }
  0x35   : > { %v189_v34 = vrot.slane %v188_v30, 2  ;;  %v203_v35 = vadd.f32 %v202_v31, %v201_v27  ;;  %v179_v36 = vmin.f32 %v178_v32, 100.0  ;;  %v182_v37 = vmin.f32 %v181_v33, 100.0 }
  0x37   : > { %v190_v38 = vadd.f32 %v189_v34, %v188_v30  ;;  %v204_v39 = vrot.slane %v203_v35, 2  ;;  %v183_v40 = vmul.f32 %v179_v36, %v157_v1  ;;  %v185_v41 = vmul.f32 %v184_v29, %v182_v37 }
  0x39   : > { %v191_v42 = vrot.slane %v190_v38, 1  ;;  %v205_v43 = vadd.f32 %v204_v39, %v203_v35  ;;  %v186_v44 = vadd.f32 %v185_v41, %v183_v40 }
  0x3b   : > { %v192_v45 = vadd.f32 %v191_v42, %v190_v38  ;;  %v206_v46 = vrot.slane %v205_v43, 1  ;;  %v209_v47 = vrot.slane %v186_v44, 4 }
  0x3d   : > { %217 = vst [vmem:[%s352_s20] sm:$0x1] %v192_v45  ;;  %v207_v48 = vadd.f32 %v206_v46, %v205_v43  ;;  %v210_v49 = vadd.f32 %v209_v47, %v186_v44 }
  0x3f   : > { %219 = vst [vmem:[%s352_s20 + $0x2] sm:$0x1] %v207_v48  ;;  %v211_v50 = vrot.slane %v210_v49, 2 }
  0x41   : > { %v212_v51 = vadd.f32 %v211_v50, %v210_v49 }
  0x43   : > { %v213_v52 = vrot.slane %v212_v51, 1 }
  0x45   : > { %v214_v53 = vadd.f32 %v213_v52, %v212_v51 }
  0x47   : > { %220 = vst [vmem:[%s352_s20 + $0x3] sm:$0x1] %v214_v53 }
  0x48 PF: > { %s12_s9 = sadd.s32 1, %s317_s9  }
  0x49   : > { %p9_p4 = scmp.ge.s32.totalorder %s12_s9, 4  }
  0x4b   :  { %11 = sbr.rel (!%p9_p4) target bundleno = 1 (0x1), region = 61 }

</bundles_post_ra>
